<compile_context>
chip_gen: v5e
topology: v5e:2x2
jax: 0.10.0
libtpu: 0.0.40
codegen_flags: <defaults>
</compile_context>

<pallas_src>
import functools

import jax
import jax.numpy as jnp
from jax.experimental import pallas as pl
from jax.experimental.pallas import tpu as pltpu


def _round_up(x, m):
    return (x + m - 1) // m * m


def _pick_ti(I, target, quantum=128):
    """Divisor of I that is a multiple of `quantum`, closest to `target`
    (ties -> larger), capped at 2*target; falls back to full I."""
    if I <= max(target, quantum):
        return I
    best = None
    t = quantum
    cap = min(I, 2 * target)
    while t <= cap:
        if I % t == 0:
            if (best is None
                    or abs(t - target) < abs(best - target)
                    or (abs(t - target) == abs(best - target) and t > best)):
                best = t
        t += quantum
    return best if best is not None else I


def _device_defaults():
    """Chip-dependent (tm, ti, vmem_limit) defaults."""
    kind = ""
    try:
        kind = jax.devices()[0].device_kind.lower()
    except Exception:  # pragma: no cover - defensive
        pass
    if "v5e" in kind or "v5 lite" in kind or "v5litepod" in kind:
        # v5e: 197 TF/s vs ~0.82 TB/s HBM -> tm~256 already saturates roofline.
        return 256, 256, 64 * 1024 * 1024
    if "v7" in kind:
        # v7x: only 64 MiB VMEM per TC -> keep working set <= ~48 MiB.
        return 512, 256, 48 * 1024 * 1024
    # v6e / default: 918 TF/s vs ~1.37 TB/s -> need tm ~ 670+.
    return 768, 256, 96 * 1024 * 1024


def _mlp_kernel(x_ref, wg_ref, wu_ref, wd_ref, o_ref, acc_ref, *, n_k):
    # x_ref: (tm, H)   wg_ref/wu_ref: (H, ti)   wd_ref: (ti, H)
    # o_ref: (tm, H)   acc_ref: (tm, H) f32 scratch (unused when n_k == 1)
    x = x_ref[...]
    gate = jnp.dot(x, wg_ref[...], preferred_element_type=jnp.float32)
    up = jnp.dot(x, wu_ref[...], preferred_element_type=jnp.float32)

    # SiLU applied to the product gate*up — matches the module as written.
    prod = gate * up
    act = prod * jax.nn.sigmoid(prod)            # f32 VPU/EUP math

    partial = jnp.dot(act.astype(wd_ref.dtype), wd_ref[...],
                      preferred_element_type=jnp.float32)

    if n_k == 1:
        # Single reduction step: skip the accumulator entirely.
        o_ref[...] = partial.astype(o_ref.dtype)
    else:
        k = pl.program_id(1)

        @pl.when(k == 0)
        def _():
            acc_ref[...] = partial

        @pl.when(jnp.logical_and(k > 0, k < n_k - 1))
        def _():
            acc_ref[...] += partial

        @pl.when(k == n_k - 1)
        def _():
            # Fused epilogue: add last partial directly into the output store.
            o_ref[...] = (acc_ref[...] + partial).astype(o_ref.dtype)


def minicpm_mlp(x, wg, wu, wd, *, tm=None, ti=None, vmem_limit_bytes=None):
    """x: [B, S, H]; wg/wu: [H, I]; wd: [I, H] -> [B, S, H]."""
    B, S, H = x.shape
    Hw, I = wg.shape
    assert Hw == H and wu.shape == (H, I) and wd.shape == (I, H)

    tm_d, ti_d, vmem_d = _device_defaults()
    tm_target = tm_d if tm is None else tm
    ti_target = ti_d if ti is None else ti
    vmem_limit_bytes = vmem_d if vmem_limit_bytes is None else vmem_limit_bytes

    M = B * S
    x2d = x.reshape(M, H)

    # Sublane quantum: 8 rows for f32, 16 for bf16, 32 for 8-bit inputs.
    quantum = max(8, 32 // jnp.dtype(x.dtype).itemsize)

    # Token tile: minimise padding — spread M over the number of tiles implied
    # by the target, then round each tile up to the sublane quantum.
    n_tiles = pl.cdiv(M, tm_target)
    tm = _round_up(pl.cdiv(M, n_tiles), quantum)
    Mp = n_tiles * tm
    if Mp != M:
        x2d = jnp.pad(x2d, ((0, Mp - M), (0, 0)))

    # Intermediate tile: lane-aligned divisor of I near the target.
    ti = _pick_ti(I, ti_target)
    ng = I // ti

    weight_bytes = ((wg.size + wu.size) * wg.dtype.itemsize
                    + wd.size * wd.dtype.itemsize)
    bytes_accessed = int(
        x2d.size * x2d.dtype.itemsize          # activations in
        + n_tiles * weight_bytes               # weights re-streamed per token tile
        + Mp * H * x.dtype.itemsize)           # activations out
    cost = pl.CostEstimate(
        flops=int(6 * Mp * H * I),             # 2*M*H*I (gate) + same (up) + same (down)
        transcendentals=int(Mp * I),           # sigmoid
        bytes_accessed=bytes_accessed)

    kernel = functools.partial(_mlp_kernel, n_k=ng)

    out2d = pl.pallas_call(
        kernel,
        out_shape=jax.ShapeDtypeStruct((Mp, H), x.dtype),
        grid_spec=pltpu.PrefetchScalarGridSpec(
            num_scalar_prefetch=0,
            grid=(n_tiles, ng),                                  # (tokens, I-reduction)
            in_specs=[
                pl.BlockSpec((tm, H), lambda i, k: (i, 0)),      # x tile
                pl.BlockSpec((H, ti), lambda i, k: (0, k)),      # gate weights
                pl.BlockSpec((H, ti), lambda i, k: (0, k)),      # up weights
                pl.BlockSpec((ti, H), lambda i, k: (k, 0)),      # down weights
            ],
            out_specs=pl.BlockSpec((tm, H), lambda i, k: (i, 0)),
            scratch_shapes=[pltpu.VMEM((tm, H), jnp.float32)],   # f32 accumulator
        ),
        compiler_params=pltpu.CompilerParams(
            dimension_semantics=("parallel", "arbitrary"),
            vmem_limit_bytes=vmem_limit_bytes),
        cost_estimate=cost,
    )(x2d, wg, wu, wd)

    return out2d[:M].reshape(B, S, H)


def _reference(x, wg, wu, wd):
    gate = jnp.einsum("bsh,hi->bsi", x, wg)
    up = jnp.einsum("bsh,hi->bsi", x, wu)
    prod = gate * up
    act = prod * jax.nn.sigmoid(prod)
    return jnp.einsum("bsi,ih->bsh", act, wd)


if __name__ == "__main__":
    # Small config consistent with the module: hidden_size=32, intermediate_size=64.
    batch, seq, hidden, intermediate = 2, 8, 32, 64

    key = jax.random.PRNGKey(0)
    kx, kg, ku, kd = jax.random.split(key, 4)

    x = jax.random.normal(kx, (batch, seq, hidden), dtype=jnp.float32)
    # nn.Linear(hidden, intermediate).weight is [intermediate, hidden]; we keep
    # the transposed [hidden, intermediate] layout for row-major matmul.
    wg = jax.random.normal(kg, (hidden, intermediate), dtype=jnp.float32) * 0.05
    wu = jax.random.normal(ku, (hidden, intermediate), dtype=jnp.float32) * 0.05
    wd = jax.random.normal(kd, (intermediate, hidden), dtype=jnp.float32) * 0.05

    out = minicpm_mlp(x, wg, wu, wd)
    out = jax.block_until_ready(out)

    ref = _reference(x, wg, wu, wd)
    assert out.shape == (batch, seq, hidden)
    assert jnp.allclose(out, ref, atol=1e-4, rtol=1e-4)

    print("KERNEL_OK")
</pallas_src>

<mosaic_0001>
module attributes {stable_mosaic.version = 11 : i64} {
  func.func @_mlp_kernel(%arg0: i32, %arg1: i32, %arg2: memref<16x32xf32, #tpu.memory_space<vmem>>, %arg3: memref<32x64xf32, #tpu.memory_space<vmem>>, %arg4: memref<32x64xf32, #tpu.memory_space<vmem>>, %arg5: memref<64x32xf32, #tpu.memory_space<vmem>>, %arg6: memref<16x32xf32, #tpu.memory_space<vmem>>, %arg7: memref<16x32xf32, #tpu.memory_space<vmem>>) attributes {dimension_semantics = [#tpu.dimension_semantics<parallel>, #tpu.dimension_semantics<arbitrary>], iteration_bounds = array<i64: 1, 1>, scalar_prefetch = 0 : i64, scratch_operands = 1 : i64, tpu.core_type = #tpu.core_type<tc>, window_params = [{transform_indices = @transform_0, window_bounds = array<i64: 16, 32>}, {transform_indices = @transform_1, window_bounds = array<i64: 32, 64>}, {transform_indices = @transform_2, window_bounds = array<i64: 32, 64>}, {transform_indices = @transform_3, window_bounds = array<i64: 64, 32>}, {transform_indices = @transform_4, window_bounds = array<i64: 16, 32>}]} {
    %c0 = arith.constant 0 : index
    %c0_0 = arith.constant 0 : index
    %0 = vector.load %arg2[%c0, %c0_0] : memref<16x32xf32, #tpu.memory_space<vmem>>, vector<16x32xf32>
    %c0_1 = arith.constant 0 : index
    %c0_2 = arith.constant 0 : index
    %1 = vector.load %arg3[%c0_1, %c0_2] : memref<32x64xf32, #tpu.memory_space<vmem>>, vector<32x64xf32>
    %cst = arith.constant dense<0.000000e+00> : vector<16x64xf32>
    %2 = tpu.matmul %0, %1, %cst {dimension_numbers = #tpu.dot_dimension_numbers<[1], [0], [0], [1], [0, 0, 1, 1], [], []>} : vector<16x32xf32>, vector<32x64xf32>, vector<16x64xf32> -> vector<16x64xf32>
    %c0_3 = arith.constant 0 : index
    %c0_4 = arith.constant 0 : index
    %3 = vector.load %arg4[%c0_3, %c0_4] : memref<32x64xf32, #tpu.memory_space<vmem>>, vector<32x64xf32>
    %cst_5 = arith.constant dense<0.000000e+00> : vector<16x64xf32>
    %4 = tpu.matmul %0, %3, %cst_5 {dimension_numbers = #tpu.dot_dimension_numbers<[1], [0], [0], [1], [0, 0, 1, 1], [], []>} : vector<16x32xf32>, vector<32x64xf32>, vector<16x64xf32> -> vector<16x64xf32>
    %5 = arith.mulf %2, %4 : vector<16x64xf32>
    %6 = arith.negf %5 : vector<16x64xf32>
    %7 = math.exp %6 : vector<16x64xf32>
    %cst_6 = arith.constant 1.000000e+00 : f32
    %8 = vector.broadcast %cst_6 : f32 to vector<16x64xf32>
    %9 = arith.addf %8, %7 : vector<16x64xf32>
    %10 = arith.divf %8, %9 : vector<16x64xf32>
    %11 = arith.mulf %5, %10 : vector<16x64xf32>
    %c0_7 = arith.constant 0 : index
    %c0_8 = arith.constant 0 : index
    %12 = vector.load %arg5[%c0_7, %c0_8] : memref<64x32xf32, #tpu.memory_space<vmem>>, vector<64x32xf32>
    %cst_9 = arith.constant dense<0.000000e+00> : vector<16x32xf32>
    %13 = tpu.matmul %11, %12, %cst_9 {dimension_numbers = #tpu.dot_dimension_numbers<[1], [0], [0], [1], [0, 0, 1, 1], [], []>} : vector<16x64xf32>, vector<64x32xf32>, vector<16x32xf32> -> vector<16x32xf32>
    %c0_10 = arith.constant 0 : index
    %c0_11 = arith.constant 0 : index
    %14 = vector.load %arg6[%c0_10, %c0_11] : memref<16x32xf32, #tpu.memory_space<vmem>>, vector<16x32xf32>
    tpu.vector_store %arg6[%c0_10, %c0_11], %13 {strides = array<i32>} : memref<16x32xf32, #tpu.memory_space<vmem>>, vector<16x32xf32>,
    return
  }
  func.func @transform_0(%arg0: i32, %arg1: i32) -> (i32, i32) {
    %c0_i32 = arith.constant 0 : i32
    %c0_i32_0 = arith.constant 0 : i32
    return %arg0, %c0_i32 : i32, i32
  }
  func.func @transform_1(%arg0: i32, %arg1: i32) -> (i32, i32) {
    %c0_i32 = arith.constant 0 : i32
    %c0_i32_0 = arith.constant 0 : i32
    return %c0_i32, %arg1 : i32, i32
  }
  func.func @transform_2(%arg0: i32, %arg1: i32) -> (i32, i32) {
    %c0_i32 = arith.constant 0 : i32
    %c0_i32_0 = arith.constant 0 : i32
    return %c0_i32, %arg1 : i32, i32
  }
  func.func @transform_3(%arg0: i32, %arg1: i32) -> (i32, i32) {
    %c0_i32 = arith.constant 0 : i32
    %c0_i32_0 = arith.constant 0 : i32
    return %arg1, %c0_i32 : i32, i32
  }
  func.func @transform_4(%arg0: i32, %arg1: i32) -> (i32, i32) {
    %c0_i32 = arith.constant 0 : i32
    %c0_i32_0 = arith.constant 0 : i32
    return %arg0, %c0_i32 : i32, i32
  }
}

</mosaic_0001>

<bundles_post_ra>
// kernel: tpu_custom_call.1
= control target key start
LH: loop header
LB: loop body
LE: loop exit
PB: predicated region body
PF: predicated region fallthrough
CT: control target
= control target key end

     0   :  { %s327_s0 = inlined_call_operand.vmem [shape: f32[16,32], index: 0, kind: input, shape index: {}]   ;;  %s328_s1 = inlined_call_operand.vmem [shape: f32[32,64], index: 1, kind: input, shape index: {}]   ;;  %s329_s2 = inlined_call_operand.vmem [shape: f32[32,64], index: 2, kind: input, shape index: {}]   ;;  %s330_s3 = inlined_call_operand.vmem [shape: f32[64,32], index: 3, kind: input, shape index: {}]   ;;  %s331_s4 = inlined_call_operand.hbm [shape: f32[16,32], index: 4, kind: output, shape index: {}]  }
   0x1   :  { %v23_v0 = vld [vmem:[%s328_s1 + $0x18] sm:$0xff]  ;;  %v22_v2 = vld [vmem:[%s328_s1 + $0x10] sm:$0xff]  ;;  %v21_v4 = vld [vmem:[%s328_s1 + $0x8] sm:$0xff] }
   0x2   :  { %v57_v1 = vld [vmem:[%s329_s2 + $0x18] sm:$0xff]  ;;  %43 = vmatpush.msra.mxu0 %v23_v0  ;;  %v56_v3 = vld [vmem:[%s329_s2 + $0x10] sm:$0xff]  ;;  %v55_v5 = vld [vmem:[%s329_s2 + $0x8] sm:$0xff] }
   0x3   :  { %70 = vmatpush.msra.mxu1 %v57_v1 }
   0x4   :  { %44 = vmatpush.msra.mxu0 %v22_v2 }
   0x5   :  { %71 = vmatpush.msra.mxu1 %v56_v3 }
   0x6   :  { %9 = vsyncpa [#allocation4], 0  ;;  %v20_v6 = vld [vmem:[%s328_s1] sm:$0xff]  ;;  %45 = vmatpush.msra.mxu0 %v21_v4  ;;  %vm24_vm0 = vcmask 261120   ;;  %v19_v9 = vld [vmem:[%s327_s0 + $0x8] sm:$0xff]  ;;  %vm131_vm5 = vcmask 523264  }
   0x7   :  { %v54_v7 = vld [vmem:[%s329_s2] sm:$0xff]  ;;  %72 = vmatpush.msra.mxu1 %v55_v5  ;;  %v130_v10 = vld [vmem:[%s330_s3 + $0x38] sm:$0xff]  ;;  %v129_v11 = vld [vmem:[%s330_s3 + $0x30] sm:$0xff]  ;;  %s169_s25 = sshll.u32 %s331_s4, 4  ;;  %s235_s26 = smov 128   ;;  %s170_s25 = int_to_ptr.hbm [resolvable:$true] %s169_s25 }
   0x8   :  { %v18_v8 = vld [vmem:[%s327_s0] sm:$0xff]  ;;  %46 = vmatpush.msra.mxu0 %v20_v6  ;;  %146 = vmatpush.msra.mxu2 %v130_v10  ;;  %v128_v12 = vld [vmem:[%s330_s3 + $0x28] sm:$0xff]  ;;  %v126_v14 = vld [vmem:[%s330_s3 + $0x18] sm:$0xff]  ;;  %s236_s27 = smov 8  }
   0x9   :  { %73 = vmatpush.msra.mxu1 %v54_v7  ;;  %181 = vmatmul.msk.f32.vlgmr.msra.gmra.mxu0 %vm24_vm0, %v18_v8  ;;  %v127_v13 = vld [vmem:[%s330_s3 + $0x20] sm:$0xff]  ;;  %v125_v15 = vld [vmem:[%s330_s3 + $0x10] sm:$0xff]  ;;  %v124_v16 = vld [vmem:[%s330_s3 + $0x8] sm:$0xff] }
   0xa   :  { %183 = vmatmul.msk.f32.vlgmr.msra.gmra.mxu1 %vm24_vm0, %v18_v8  ;;  %189 = vmatpush.msra.mxu3 %v130_v10  ;;  %v123_v17 = vld [vmem:[%s330_s3] sm:$0xff]  ;;  %s234_s3 = smov [#allocation3]  }
   0xb   :  { %147 = vmatpush.msra.mxu2 %v129_v11  ;;  %s167_s22 = sshll.u32 %s234_s3, 4  ;;  %s168_s22 = int_to_ptr.vmem [resolvable:$true] %s167_s22 }
   0xc   :  { %190 = vmatpush.msra.mxu3 %v129_v11 }
   0xd   :  { %148 = vmatpush.msra.mxu2 %v128_v12 }
   0xe   :  { %191 = vmatpush.msra.mxu3 %v128_v12 }
   0xf   :  { %149 = vmatpush.msra.mxu2 %v127_v13 }
  0x10   :  { %192 = vmatpush.msra.mxu3 %v127_v13 }
  0x11   :  { %182 = vmatmul.msk.f32.gmra.mxu0 %vm24_vm0, %v19_v9  ;;  %150 = vmatpush.msra.mxu2 %v126_v14 }
  0x12   :  { %184 = vmatmul.msk.f32.gmra.mxu1 %vm24_vm0, %v19_v9  ;;  %193 = vmatpush.msra.mxu3 %v126_v14 }
  0x13   :  { %151 = vmatpush.msra.mxu2 %v125_v15 }
  0x14   :  { %194 = vmatpush.msra.mxu3 %v125_v15 }
  0x15   :  { %152 = vmatpush.msra.mxu2 %v124_v16 }
  0x16   :  { %195 = vmatpush.msra.mxu3 %v124_v16 }
  0x17   :  { %153 = vmatpush.msra.mxu2 %v123_v17 }
  0x18   :  { %196 = vmatpush.msra.mxu3 %v123_v17 }
  0x86   :  { %v48_v18 = vpop.f32.mrf.mxu0 }
  0x87   :  { %v75_v19 = vpop.f32.mrf.mxu1 }
  0x88   :  { %v81_v20 = vmul.f32 %v75_v19, %v48_v18 }
  0x8a   :  { %v185_v21 = vmul.f32 -1.442695, %v81_v20 }
  0x8c   :  { %200 = vpow2.f32 %v185_v21 }
  0x8e   :  { %v51_v22 = vpop.f32.mrf.mxu0 }
  0x8f   :  { %v78_v23 = vpop.f32.mrf.mxu1 }
  0x90   :  { %v82_v24 = vmul.f32 %v78_v23, %v51_v22 }
  0x92   :  { %v201_v25 = vpop.eup %200  ;;  %v186_v26 = vmul.f32 -1.442695, %v82_v24 }
  0x93   :  { %v89_v27 = vadd.f32 1.0, %v201_v25 }
  0x94   :  { %202 = vpow2.f32 %v186_v26 }
  0x95   :  { %204 = vrcp.f32 %v89_v27  ;;  %v102_v33 = vand.u32 2147483648, %v89_v27  ;;  %v100_v35 = vand.u32 2147483647, %v89_v27  ;;  %vm96_vm2 = vweird.f32 %v89_v27 }
  0x97   :  { %v103_v38 = vor.u32 1.1754944e-38, %v102_v33  ;;  %vm101_vm4 = vcmp.eq.f32.partialorder %v100_v35, 8.507059e+37 }
  0x9a   :  { %v203_v28 = vpop.eup %202 }
  0x9b   :  { %v205_v29 = vpop.eup %204  ;;  %v90_v30 = vadd.f32 1.0, %v203_v28 }
  0x9c   :  { %v92_v31 = vmul.f32 %v205_v29, %v89_v27  ;;  %vm97_vm1 = vweird.f32 %v205_v29 }
  0x9d   :  { %206 = vrcp.f32 %v90_v30  ;;  %vm98_vm3 = vmor %vm96_vm2, %vm97_vm1  ;;  %v117_v44 = vand.u32 2147483648, %v90_v30  ;;  %v115_v46 = vand.u32 2147483647, %v90_v30  ;;  %vm111_vm7 = vweird.f32 %v90_v30 }
  0x9e   :  { %v93_v32 = vsub.f32 1.0, %v92_v31 }
  0x9f   :  { %v118_v48 = vor.u32 1.1754944e-38, %v117_v44  ;;  %vm116_vm9 = vcmp.eq.f32.partialorder %v115_v46, 8.507059e+37 }
  0xa0   :  { %v94_v34 = vmul.f32 %v205_v29, %v93_v32 }
  0xa2   :  { %v95_v36 = vadd.f32 %v205_v29, %v94_v34 }
  0xa3   :  { %v207_v37 = vpop.eup %206 }
  0xa4   :  { %v99_v39 = vsel %vm98_vm3, %v205_v29, %v95_v36  ;;  %v107_v40 = vmul.f32 %v207_v37, %v90_v30  ;;  %vm112_vm6 = vweird.f32 %v207_v37 }
  0xa5   :  { %v104_v41 = vsel %vm101_vm4, %v103_v38, %v99_v39  ;;  %vm113_vm8 = vmor %vm111_vm7, %vm112_vm6 }
  0xa6   :  { %v121_v42 = vmul.f32 %v104_v41, %v81_v20  ;;  %v108_v43 = vsub.f32 1.0, %v107_v40 }
  0xa8   :  { %v109_v45 = vmul.f32 %v207_v37, %v108_v43  ;;  %187 = vmatmul.msk.f32.vlgmr.msra.gmra.mxu2 %vm131_vm5, %v121_v42 }
  0xaa   :  { %v110_v47 = vadd.f32 %v207_v37, %v109_v45 }
  0xac   :  { %v114_v49 = vsel %vm113_vm8, %v207_v37, %v110_v47 }
  0xad   :  { %v119_v50 = vsel %vm116_vm9, %v118_v48, %v114_v49 }
  0xae   :  { %v122_v51 = vmul.f32 %v119_v50, %v82_v24 }
  0xb0   :  { %188 = vmatmul.msk.f32.vlgmr.msra.gmra.mxu3 %vm131_vm5, %v122_v51 }
 0x12b   :  { %v155_v52 = vpop.f32.mrf.mxu2 }
 0x12c   :  { %161 = vst.msk [vmem:[#allocation3] sm:$0xff] %vm24_vm0, %v155_v52 }
 0x133   :  { %v158_v53 = vpop.f32.mrf.mxu3 }
 0x134   :  { %162 = vst.msk [vmem:[#allocation3 + $0x8] sm:$0xff] %vm24_vm0, %v158_v53 }
 0x135   :  { %175 = dma.vmem_to_hbm [thread:$0]  %s168_s22, 256, %s170_s25, [#allocation4], %s235_s26, %s235_s26, %s236_s27  }
 0x136   :  { %232 = dma.done.wait [#allocation4], 256  }
 0x137   :  { %233 = vsyncadd [#allocation4], 4294967040 }
 0x138   :  { %180 = vsyncpa [#allocation4], 1 }

</bundles_post_ra>
